<compile_context>
chip_gen: v7x
topology: tpu7x:2x2x1
jax: 0.10.0
libtpu: 0.0.40
codegen_flags: <defaults>
</compile_context>

<pallas_src>
import jax
import jax.numpy as jnp
from jax import lax
from jax.experimental import pallas as pl
from jax.experimental.pallas import tpu as pltpu

D = 768          # hidden size fixed by the module (queue: 768 x K)
K = 8192         # queue length fixed by the module (self.K)
M_MOM = 0.999    # momentum coefficient (self.m)
TEMP = 0.05      # temperature (self.T)


# ----------------------------------------------------------------------------
# Kernel 1: masked mean pooling over the sequence axis + L2 normalization,
# fused over a stacked leading axis (code/nl x current/momentum encoder).
#   vec = sum_s(h[b,s,:] * mask[b,s]) / sum_s(mask[b,s]);  vec /= max(||vec||, eps)
# Mask is computed in-kernel from the int32 token ids (pad id == 1).
# ----------------------------------------------------------------------------
def _pool_normalize_kernel(tok_ref, h_ref, out_ref):
    toks = tok_ref[...]                                   # (tb, S) int32
    keep = toks != 1                                      # .ne(1)
    m = keep.astype(jnp.float32)                          # (tb, S)
    h = h_ref[...]                                        # (tb, S, D) f32
    summed = jnp.sum(jnp.where(keep[:, :, None], h, 0.0), axis=1)   # (tb, D)
    # NOTE: a fully padded row gives denom == 0 -> NaN; this matches the torch
    # reference semantics.
    denom = jnp.sum(m, axis=1, keepdims=True)             # (tb, 1)
    vec = summed / denom
    norm = jnp.sqrt(jnp.sum(vec * vec, axis=1, keepdims=True))
    out_ref[...] = vec / jnp.maximum(norm, 1e-12)         # F.normalize eps=1e-12


def pool_normalize(tokens, hidden, tb=None):
    """tokens: (N, B, S) int32; hidden: (N, B, S, D) f32 -> (N, B, D) f32."""
    N, B, S, Dh = hidden.shape
    assert Dh == D
    if tb is None:
        tb = B if B <= 8 else 8
    assert B % tb == 0
    return pl.pallas_call(
        _pool_normalize_kernel,
        out_shape=jax.ShapeDtypeStruct((N, B, D), jnp.float32),
        grid=(N, B // tb),
        in_specs=[pl.BlockSpec((None, tb, S), lambda n, b: (n, b, 0)),
                  pl.BlockSpec((None, tb, S, D), lambda n, b: (n, b, 0, 0))],
        out_specs=pl.BlockSpec((None, tb, D), lambda n, b: (n, b, 0)),
        compiler_params=pltpu.CompilerParams(
            dimension_semantics=("parallel", "parallel")),
    )(tokens, hidden)


# ----------------------------------------------------------------------------
# Kernel 2: momentum update of the (momentum) encoder parameters.
#   p_m <- p_m * m + p * (1 - m)     (elementwise, streamed row tiles, in place)
# ----------------------------------------------------------------------------
def _momentum_kernel(p_ref, pm_ref, out_ref):
    out_ref[...] = pm_ref[...] * M_MOM + p_ref[...] * (1.0 - M_MOM)


def momentum_update(p, p_m, tv=512):
    V, Dp = p.shape
    tv = min(tv, V)
    assert V % tv == 0
    return pl.pallas_call(
        _momentum_kernel,
        out_shape=jax.ShapeDtypeStruct((V, Dp), p.dtype),
        grid=(V // tv,),
        in_specs=[pl.BlockSpec((tv, Dp), lambda i: (i, 0)),
                  pl.BlockSpec((tv, Dp), lambda i: (i, 0))],
        out_specs=pl.BlockSpec((tv, Dp), lambda i: (i, 0)),
        input_output_aliases={1: 0},   # pure RMW: output reuses p_m's buffer
        compiler_params=pltpu.CompilerParams(dimension_semantics=("parallel",)),
    )(p, p_m)


# ----------------------------------------------------------------------------
# Kernel 3: fused MoCo contrastive losses (both directions in one call).
#   slot 0: code_vec vs queue_nl  (positive = nl_vec_m)
#   slot 1: nl_vec   vs queue_code(positive = code_vec_m)
#   l_pos = <vec, pos_vec> / T  (target logit, class 0)
#   l_neg = vec @ queue_tile^T / T, streamed over K tiles (bf16 queue, f32 acc)
#   loss_b = logsumexp([l_pos_b, l_neg_b,:]) - l_pos_b     (CE with label 0)
# Online logsumexp state lives in VMEM scratch across the K ("arbitrary") axis;
# the leading slot axis is "parallel" so v7x's two TensorCores split the work.
# ----------------------------------------------------------------------------
def _moco_loss_kernel(vec_ref, pos_ref, queue_ref, loss_ref, m_sc, s_sc, pos_sc):
    k = pl.program_id(1)

    @pl.when(k == 0)
    def _():
        pos = jnp.sum(vec_ref[...] * pos_ref[...], axis=-1, keepdims=True) * (1.0 / TEMP)
        pos_sc[...] = pos
        m_sc[...] = pos
        s_sc[...] = jnp.ones_like(pos)         # exp(pos - pos) contribution

    vb = vec_ref[...].astype(jnp.bfloat16)                        # (B, D)
    q = queue_ref[...]                                            # (tk, D) bf16
    neg = lax.dot_general(vb, q, (((1,), (1,)), ((), ())),
                          preferred_element_type=jnp.float32) * (1.0 / TEMP)  # (B, tk)
    m_new = jnp.maximum(m_sc[...], jnp.max(neg, axis=-1, keepdims=True))
    s_sc[...] = (s_sc[...] * jnp.exp(m_sc[...] - m_new)
                 + jnp.sum(jnp.exp(neg - m_new), axis=-1, keepdims=True))
    m_sc[...] = m_new

    @pl.when(k == pl.num_programs(1) - 1)
    def _():
        loss_ref[...] = m_sc[...] + jnp.log(s_sc[...]) - pos_sc[...]


def moco_loss_per_example(vecs, poss, queues, tk=2048):
    """vecs/poss: (2, B, D) f32 queries/positives; queues: (2, K, D) bf16 with
    [0]=queue_code, [1]=queue_nl.  Slot q uses queue (1 - q)."""
    _, B, Dv = vecs.shape
    _, Kq, Dq = queues.shape
    assert Dv == D and Dq == D and Kq % tk == 0
    return pl.pallas_call(
        _moco_loss_kernel,
        out_shape=jax.ShapeDtypeStruct((2, B, 1), jnp.float32),
        grid_spec=pltpu.PrefetchScalarGridSpec(
            num_scalar_prefetch=0,
            grid=(2, Kq // tk),
            in_specs=[pl.BlockSpec((None, B, D), lambda q, k: (q, 0, 0)),
                      pl.BlockSpec((None, B, D), lambda q, k: (q, 0, 0)),
                      # TODO(synk): add pipeline_mode=pl.Buffered(3) here on v7x
                      # if the queue DMA is still exposed after tiling/bf16.
                      pl.BlockSpec((None, tk, D), lambda q, k: (1 - q, k, 0))],
            out_specs=pl.BlockSpec((None, B, 1), lambda q, k: (q, 0, 0)),
            scratch_shapes=[pltpu.VMEM((B, 1), jnp.float32),   # running max
                            pltpu.VMEM((B, 1), jnp.float32),   # running sum-exp
                            pltpu.VMEM((B, 1), jnp.float32)],  # positive logit
        ),
        compiler_params=pltpu.CompilerParams(
            dimension_semantics=("parallel", "arbitrary")),
    )(vecs, poss, queues)


# ----------------------------------------------------------------------------
# Forward pass (both code_inputs and nl_inputs present -> training branch).
# ----------------------------------------------------------------------------
def forward(emb, emb_m, queues, ptr_code, ptr_nl,
            code_inputs, nl_inputs, train_batch_size):
    # momentum update of key encoder parameters (torch: no_grad)
    emb_m_new = momentum_update(emb, emb_m)

    # synthetic deterministic encoder (stand-in for the external transformer):
    # last_hidden_state = embedding lookup of the token ids (plain JAX glue).
    tokens = jnp.stack([code_inputs, nl_inputs, code_inputs, nl_inputs])       # (4,B,S)
    hidden = jnp.stack([emb[code_inputs], emb[nl_inputs],
                        emb_m_new[code_inputs], emb_m_new[nl_inputs]])         # (4,B,S,D)

    vecs4 = pool_normalize(tokens, hidden)                                     # (4,B,D)
    code_vec, nl_vec, code_vec_m, nl_vec_m = (vecs4[0], vecs4[1],
                                              vecs4[2], vecs4[3])

    # fused contrastive cross-entropy (target class 0 == the positive logit)
    vecs = jnp.stack([code_vec, nl_vec])        # queries
    poss = jnp.stack([nl_vec_m, code_vec_m])    # positive (momentum) keys
    per_example = moco_loss_per_example(vecs, poss, queues)                    # (2,B,1)
    loss = jnp.mean(per_example[0]) + jnp.mean(per_example[1])

    # queue dequeue/enqueue: contiguous row-block writes into (2, K, D) bf16
    B = code_inputs.shape[0]
    if B == train_batch_size:
        z = jnp.int32(0)
        one = jnp.int32(1)
        queues = lax.dynamic_update_slice(
            queues, code_vec_m.astype(queues.dtype)[None], (z, ptr_code, z))
        ptr_code = (ptr_code + B) % K
        queues = lax.dynamic_update_slice(
            queues, nl_vec_m.astype(queues.dtype)[None], (one, ptr_nl, z))
        ptr_nl = (ptr_nl + B) % K

    new_state = (emb_m_new, queues, ptr_code, ptr_nl)
    return (loss, code_vec, nl_vec), new_state


# ----------------------------------------------------------------------------
# Pure-JAX reference for verification (uses the same bf16-stored queues).
# ----------------------------------------------------------------------------
def reference_forward(emb, emb_m, queues, code_inputs, nl_inputs):
    def pool(table, toks):
        h = table[toks]
        m = (toks != 1).astype(jnp.float32)
        v = (h * m[:, :, None]).sum(1) / m.sum(-1)[:, None]
        return v / jnp.maximum(jnp.linalg.norm(v, axis=1, keepdims=True), 1e-12)

    code_vec = pool(emb, code_inputs)
    nl_vec = pool(emb, nl_inputs)
    emb_m_new = emb_m * M_MOM + emb * (1.0 - M_MOM)
    code_vec_m = pool(emb_m_new, code_inputs)
    nl_vec_m = pool(emb_m_new, nl_inputs)

    q_code = queues[0].astype(jnp.float32)          # (K, D)
    q_nl = queues[1].astype(jnp.float32)

    def ce(vec, pos, q):
        l_pos = jnp.sum(vec * pos, axis=1, keepdims=True)
        # match the kernel's bf16 MXU operands (queue is stored in bf16 anyway)
        vq = vec.astype(jnp.bfloat16).astype(jnp.float32)
        l_neg = vq @ q.T
        logits = jnp.concatenate([l_pos, l_neg], axis=1) / TEMP
        return jnp.mean(jax.nn.logsumexp(logits, axis=1) - logits[:, 0])

    loss = ce(code_vec, nl_vec_m, q_nl) + ce(nl_vec, code_vec_m, q_code)
    return loss, code_vec, nl_vec


if __name__ == "__main__":
    B, S, V = 4, 8, 128          # small batch / seq / vocab for the demo
    key = jax.random.PRNGKey(0)
    k_emb, k_qc, k_qn, k_tc, k_tn = jax.random.split(key, 5)

    emb = jax.random.normal(k_emb, (V, D), dtype=jnp.float32) * 0.02
    emb_m = emb + 0.0            # separate buffer: param_m.data.copy_(param.data)

    def init_queue(k):
        q = jax.random.normal(k, (K, D), dtype=jnp.float32)
        return q / jnp.linalg.norm(q, axis=1, keepdims=True)   # normalize each key

    # stacked negative queues, bf16, row-major (K, D): [0]=queue_code, [1]=queue_nl
    queues = jnp.stack([init_queue(k_qc), init_queue(k_qn)]).astype(jnp.bfloat16)
    ptr_code = jnp.int32(0)
    ptr_nl = jnp.int32(0)

    # token ids; id == 1 is padding (matches `.ne(1)` masking)
    code_inputs = jax.random.randint(k_tc, (B, S), 2, V).astype(jnp.int32)
    nl_inputs = jax.random.randint(k_tn, (B, S), 2, V).astype(jnp.int32)
    code_inputs = code_inputs.at[:, -2:].set(1)   # some padding at the tail
    nl_inputs = nl_inputs.at[:, -3:].set(1)

    # pure-JAX reference (computed first)
    loss_ref, code_vec_ref, nl_vec_ref = reference_forward(
        emb, emb_m, queues, code_inputs, nl_inputs)
    jax.block_until_ready(loss_ref)

    (loss, code_vec, nl_vec), new_state = forward(
        emb, emb_m, queues, ptr_code, ptr_nl,
        code_inputs, nl_inputs, train_batch_size=B)
    jax.block_until_ready((loss, code_vec, nl_vec, new_state))

    assert jnp.allclose(code_vec, code_vec_ref, rtol=1e-4, atol=1e-4)
    assert jnp.allclose(nl_vec, nl_vec_ref, rtol=1e-4, atol=1e-4)
    assert jnp.allclose(loss, loss_ref, rtol=2e-3, atol=2e-3), (loss, loss_ref)

    print("KERNEL_OK")
</pallas_src>

<mosaic_0001>
module attributes {stable_mosaic.version = 11 : i64} {
  func.func @_momentum_kernel(%arg0: i32, %arg1: memref<128x768xf32, #tpu.memory_space<vmem>>, %arg2: memref<128x768xf32, #tpu.memory_space<vmem>>, %arg3: memref<128x768xf32, #tpu.memory_space<vmem>>) attributes {dimension_semantics = [#tpu.dimension_semantics<parallel>], iteration_bounds = array<i64: 1>, scalar_prefetch = 0 : i64, scratch_operands = 0 : i64, tpu.core_type = #tpu.core_type<tc>, window_params = [{transform_indices = @transform_0, window_bounds = array<i64: 128, 768>}, {transform_indices = @transform_1, window_bounds = array<i64: 128, 768>}, {transform_indices = @transform_2, window_bounds = array<i64: 128, 768>}]} {
    %c0 = arith.constant 0 : index
    %c0_0 = arith.constant 0 : index
    %0 = vector.load %arg2[%c0, %c0_0] : memref<128x768xf32, #tpu.memory_space<vmem>>, vector<128x768xf32>
    %cst = arith.constant 9.990000e-01 : f32
    %1 = vector.broadcast %cst : f32 to vector<128x768xf32>
    %2 = arith.mulf %0, %1 : vector<128x768xf32>
    %c0_1 = arith.constant 0 : index
    %c0_2 = arith.constant 0 : index
    %3 = vector.load %arg1[%c0_1, %c0_2] : memref<128x768xf32, #tpu.memory_space<vmem>>, vector<128x768xf32>
    %cst_3 = arith.constant 1.000000e-03 : f32
    %4 = vector.broadcast %cst_3 : f32 to vector<128x768xf32>
    %5 = arith.mulf %3, %4 : vector<128x768xf32>
    %6 = arith.addf %2, %5 : vector<128x768xf32>
    %c0_4 = arith.constant 0 : index
    %c0_5 = arith.constant 0 : index
    %7 = vector.load %arg3[%c0_4, %c0_5] : memref<128x768xf32, #tpu.memory_space<vmem>>, vector<128x768xf32>
    tpu.vector_store %arg3[%c0_4, %c0_5], %6 {strides = array<i32>} : memref<128x768xf32, #tpu.memory_space<vmem>>, vector<128x768xf32>,
    return
  }
  func.func @transform_0(%arg0: i32) -> (i32, i32) {
    %c0_i32 = arith.constant 0 : i32
    %c0_i32_0 = arith.constant 0 : i32
    return %arg0, %c0_i32 : i32, i32
  }
  func.func @transform_1(%arg0: i32) -> (i32, i32) {
    %c0_i32 = arith.constant 0 : i32
    %c0_i32_0 = arith.constant 0 : i32
    return %arg0, %c0_i32 : i32, i32
  }
  func.func @transform_2(%arg0: i32) -> (i32, i32) {
    %c0_i32 = arith.constant 0 : i32
    %c0_i32_0 = arith.constant 0 : i32
    return %arg0, %c0_i32 : i32, i32
  }
}

</mosaic_0001>

<bundles_post_ra>
// kernel: tpu_custom_call.1
= control target key start
LH: loop header
LB: loop body
LE: loop exit
PB: predicated region body
PF: predicated region fallthrough
CT: control target
= control target key end

     0   :  { %7 = vsyncpa [#allocation3], 0  ;;  %s1008_s0 = inlined_call_operand.vmem [shape: f32[128,768], index: 0, kind: input, shape index: {}]   ;;  %s1009_s1 = inlined_call_operand.hbm [shape: f32[128,768], index: 1, kind: input, shape index: {}, may-alias: {1,2}]   ;;  %s1010_s2 = inlined_call_operand.hbm [shape: f32[128,768], index: 2, kind: output, shape index: {}, may-alias: {1,2}]  }
   0x1   :  { %8 = vsyncpa [#allocation4], 0  ;;  %s671_s9 = smov [#allocation2]   ;;  %s623_s13 = scalar_lea.hbm %s1009_s1, 12288 }
   0x2   :  { %s16_s10 = sshll.u32 %s671_s9, 4  ;;  %p624_p0 = scmp.ne.s32.totalorder %s1009_s1, %s623_s13  ;;  %s17_s10 = int_to_ptr.vmem [resolvable:$true] %s16_s10 }
   0x3   :  { %p627_p1 = scmp.lt.u32.totalorder %s623_s13, %s1009_s1 }
   0x5   :  { %p629_p2 = pnand %p627_p1, %p624_p0 }
   0x7   :  { %632 = shalt.err (!%p629_p2)
}
   0x8   :  { %s633_s18 = scalar_lea.vmem %s17_s10, 12288  ;;  %p638_p4 = scmp.lt.s32.totalorder %s17_s10, %s17_s10 }
   0x9   :  { %p634_p3 = scmp.ne.s32.totalorder %s17_s10, %s633_s18  ;;  %p639_p5 = scmp.lt.s32.totalorder %s633_s18, %s633_s18 }
   0xb   :  { %p640_p6 = por %p639_p5, %p638_p4 }
   0xd   :  { %p641_p7 = pnand %p640_p6, %p634_p3 }
   0xf   :  { %644 = shalt.err (!%p641_p7)
}
  0x10   :  { %s672_s19 = smov 768   ;;  %s673_s20 = smov 48  }
  0x11   :  { %22 = dma.hbm_to_vmem [thread:$0]  %s1009_s1, 12288, %s17_s10, [#allocation3], %s672_s19, %s672_s19, %s673_s20  }
  0x12   :  { %667 = dma.done.wait [#allocation3], 12288  }
  0x13   :  { %668 = vsyncadd [#allocation3], 4294955008  ;;  %v26_v0 = vld [vmem:[#allocation2] sm:$0xff]  ;;  %v27_v2 = vld [vmem:[#allocation2 + $0x8] sm:$0xff]  ;;  %s674_s26 = smov [#allocation5]  }
  0x14   :  { %v218_v1 = vld [vmem:[%s1008_s0] sm:$0xff]  ;;  %v122_v3 = vmul.f32 0.999, %v26_v0  ;;  %v123_v5 = vmul.f32 0.999, %v27_v2  ;;  %v219_v6 = vld [vmem:[%s1008_s0 + $0x8] sm:$0xff] }
  0x15   :  { %v314_v4 = vmul.f32 0.001, %v218_v1  ;;  %v28_v7 = vld [vmem:[#allocation2 + $0x10] sm:$0xff]  ;;  %v315_v10 = vmul.f32 0.001, %v219_v6  ;;  %v29_v13 = vld [vmem:[#allocation2 + $0x18] sm:$0xff] }
  0x16   :  { %v220_v8 = vld [vmem:[%s1008_s0 + $0x10] sm:$0xff]  ;;  %v124_v11 = vmul.f32 0.999, %v28_v7  ;;  %v221_v14 = vld [vmem:[%s1008_s0 + $0x18] sm:$0xff]  ;;  %v30_v15 = vld [vmem:[#allocation2 + $0x20] sm:$0xff]  ;;  %s607_s27 = sshll.u32 %s674_s26, 4  ;;  %s608_s27 = int_to_ptr.vmem [resolvable:$true] %s607_s27 }
  0x17   :  { %v410_v9 = vadd.f32 %v314_v4, %v122_v3  ;;  %v316_v12 = vmul.f32 0.001, %v220_v8  ;;  %v411_v16 = vadd.f32 %v315_v10, %v123_v5  ;;  %v125_v18 = vmul.f32 0.999, %v29_v13  ;;  %v222_v20 = vld [vmem:[%s1008_s0 + $0x20] sm:$0xff]  ;;  %v31_v21 = vld [vmem:[#allocation2 + $0x28] sm:$0xff]  ;;  %p650_p9 = scmp.lt.s32.totalorder %s608_s27, %s608_s27 }
  0x18   :  { %v317_v19 = vmul.f32 0.001, %v221_v14  ;;  %v126_v22 = vmul.f32 0.999, %v30_v15  ;;  %v318_v23 = vmul.f32 0.001, %v222_v20 }
  0x19   :  { %506 = vst [vmem:[#allocation5] sm:$0xff] %v410_v9  ;;  %v412_v17 = vadd.f32 %v316_v12, %v124_v11  ;;  %v127_v24 = vmul.f32 0.999, %v31_v21  ;;  %507 = vst [vmem:[#allocation5 + $0x8] sm:$0xff] %v411_v16  ;;  %v223_v26 = vld [vmem:[%s1008_s0 + $0x28] sm:$0xff]  ;;  %v32_v27 = vld [vmem:[#allocation2 + $0x30] sm:$0xff] }
  0x1a   :  { %v413_v25 = vadd.f32 %v317_v19, %v125_v18  ;;  %v224_v28 = vld [vmem:[%s1008_s0 + $0x30] sm:$0xff]  ;;  %v414_v29 = vadd.f32 %v318_v23, %v126_v22  ;;  %v319_v30 = vmul.f32 0.001, %v223_v26  ;;  %v128_v31 = vmul.f32 0.999, %v32_v27  ;;  %v33_v33 = vld [vmem:[#allocation2 + $0x38] sm:$0xff] }
  0x1b   :  { %508 = vst [vmem:[#allocation5 + $0x10] sm:$0xff] %v412_v17  ;;  %v320_v32 = vmul.f32 0.001, %v224_v28  ;;  %v225_v34 = vld [vmem:[%s1008_s0 + $0x38] sm:$0xff]  ;;  %v34_v35 = vld [vmem:[#allocation2 + $0x40] sm:$0xff]  ;;  %v35_v41 = vld [vmem:[#allocation2 + $0x48] sm:$0xff] }
  0x1c   :  { %509 = vst [vmem:[#allocation5 + $0x18] sm:$0xff] %v413_v25  ;;  %510 = vst [vmem:[#allocation5 + $0x20] sm:$0xff] %v414_v29  ;;  %v415_v36 = vadd.f32 %v319_v30, %v127_v24  ;;  %v129_v38 = vmul.f32 0.999, %v33_v33  ;;  %v321_v39 = vmul.f32 0.001, %v225_v34 }
  0x1d   :  { %v416_v37 = vadd.f32 %v320_v32, %v128_v31  ;;  %v226_v40 = vld [vmem:[%s1008_s0 + $0x40] sm:$0xff]  ;;  %v130_v42 = vmul.f32 0.999, %v34_v35  ;;  %v131_v44 = vmul.f32 0.999, %v35_v41  ;;  %v227_v46 = vld [vmem:[%s1008_s0 + $0x48] sm:$0xff] }
  0x1e   :  { %v322_v43 = vmul.f32 0.001, %v226_v40  ;;  %511 = vst [vmem:[#allocation5 + $0x28] sm:$0xff] %v415_v36  ;;  %v417_v45 = vadd.f32 %v321_v39, %v129_v38  ;;  %v36_v47 = vld [vmem:[#allocation2 + $0x50] sm:$0xff]  ;;  %v323_v50 = vmul.f32 0.001, %v227_v46 }
  0x1f   :  { %512 = vst [vmem:[#allocation5 + $0x30] sm:$0xff] %v416_v37  ;;  %v228_v48 = vld [vmem:[%s1008_s0 + $0x50] sm:$0xff]  ;;  %v132_v51 = vmul.f32 0.999, %v36_v47  ;;  %v37_v53 = vld [vmem:[#allocation2 + $0x58] sm:$0xff]  ;;  %v38_v55 = vld [vmem:[#allocation2 + $0x60] sm:$0xff] }
  0x20   :  { %v418_v49 = vadd.f32 %v322_v43, %v130_v42  ;;  %v324_v52 = vmul.f32 0.001, %v228_v48  ;;  %513 = vst [vmem:[#allocation5 + $0x38] sm:$0xff] %v417_v45  ;;  %v229_v54 = vld [vmem:[%s1008_s0 + $0x58] sm:$0xff]  ;;  %v419_v56 = vadd.f32 %v323_v50, %v131_v44  ;;  %v133_v58 = vmul.f32 0.999, %v37_v53 }
  0x21   :  { %v325_v59 = vmul.f32 0.001, %v229_v54  ;;  %v230_v60 = vld [vmem:[%s1008_s0 + $0x60] sm:$0xff]  ;;  %v39_v61 = vld [vmem:[#allocation2 + $0x68] sm:$0xff]  ;;  %v134_v62 = vmul.f32 0.999, %v38_v55 }
  0x22   :  { %514 = vst [vmem:[#allocation5 + $0x40] sm:$0xff] %v418_v49  ;;  %v420_v57 = vadd.f32 %v324_v52, %v132_v51  ;;  %v326_v63 = vmul.f32 0.001, %v230_v60  ;;  %v135_v0 = vmul.f32 0.999, %v39_v61  ;;  %515 = vst [vmem:[#allocation5 + $0x48] sm:$0xff] %v419_v56 }
  0x23   :  { %v421_v1 = vadd.f32 %v325_v59, %v133_v58  ;;  %v231_v2 = vld [vmem:[%s1008_s0 + $0x68] sm:$0xff]  ;;  %v40_v3 = vld [vmem:[#allocation2 + $0x70] sm:$0xff]  ;;  %v41_v9 = vld [vmem:[#allocation2 + $0x78] sm:$0xff]  ;;  %s645_s28 = scalar_lea.vmem %s608_s27, 12288 }
  0x24   :  { %516 = vst [vmem:[#allocation5 + $0x50] sm:$0xff] %v420_v57  ;;  %v232_v4 = vld [vmem:[%s1008_s0 + $0x70] sm:$0xff]  ;;  %v422_v5 = vadd.f32 %v326_v63, %v134_v62  ;;  %v327_v6 = vmul.f32 0.001, %v231_v2  ;;  %v136_v7 = vmul.f32 0.999, %v40_v3  ;;  %p646_p8 = scmp.ne.s32.totalorder %s608_s27, %s645_s28  ;;  %p651_p10 = scmp.lt.s32.totalorder %s645_s28, %s645_s28 }
  0x25   :  { %v328_v8 = vmul.f32 0.001, %v232_v4  ;;  %517 = vst [vmem:[#allocation5 + $0x58] sm:$0xff] %v421_v1  ;;  %v233_v10 = vld [vmem:[%s1008_s0 + $0x78] sm:$0xff]  ;;  %v42_v11 = vld [vmem:[#allocation2 + $0x80] sm:$0xff]  ;;  %v43_v17 = vld [vmem:[#allocation2 + $0x88] sm:$0xff] }
  0x26   :  { %518 = vst [vmem:[#allocation5 + $0x60] sm:$0xff] %v422_v5  ;;  %v423_v12 = vadd.f32 %v327_v6, %v135_v0  ;;  %v137_v14 = vmul.f32 0.999, %v41_v9  ;;  %v329_v15 = vmul.f32 0.001, %v233_v10  ;;  %v234_v16 = vld [vmem:[%s1008_s0 + $0x80] sm:$0xff]  ;;  %p652_p11 = por %p651_p10, %p650_p9 }
  0x27   :  { %v424_v13 = vadd.f32 %v328_v8, %v136_v7  ;;  %v138_v18 = vmul.f32 0.999, %v42_v11  ;;  %v330_v19 = vmul.f32 0.001, %v234_v16  ;;  %v139_v20 = vmul.f32 0.999, %v43_v17 }
  0x28   :  { %519 = vst [vmem:[#allocation5 + $0x68] sm:$0xff] %v423_v12  ;;  %v425_v21 = vadd.f32 %v329_v15, %v137_v14  ;;  %v235_v22 = vld [vmem:[%s1008_s0 + $0x88] sm:$0xff]  ;;  %v44_v23 = vld [vmem:[#allocation2 + $0x90] sm:$0xff]  ;;  %v45_v29 = vld [vmem:[#allocation2 + $0x98] sm:$0xff]  ;;  %p653_p12 = pnand %p652_p11, %p646_p8 }
  0x29   :  { %520 = vst [vmem:[#allocation5 + $0x70] sm:$0xff] %v424_v13  ;;  %v236_v24 = vld [vmem:[%s1008_s0 + $0x90] sm:$0xff]  ;;  %v426_v25 = vadd.f32 %v330_v19, %v138_v18  ;;  %v331_v26 = vmul.f32 0.001, %v235_v22  ;;  %v140_v27 = vmul.f32 0.999, %v44_v23 }
  0x2a   :  { %v332_v28 = vmul.f32 0.001, %v236_v24  ;;  %521 = vst [vmem:[#allocation5 + $0x78] sm:$0xff] %v425_v21  ;;  %v237_v30 = vld [vmem:[%s1008_s0 + $0x98] sm:$0xff]  ;;  %v46_v31 = vld [vmem:[#allocation2 + $0xa0] sm:$0xff]  ;;  %v47_v37 = vld [vmem:[#allocation2 + $0xa8] sm:$0xff] }
  0x2b   :  { %522 = vst [vmem:[#allocation5 + $0x80] sm:$0xff] %v426_v25  ;;  %v427_v32 = vadd.f32 %v331_v26, %v139_v20  ;;  %v141_v34 = vmul.f32 0.999, %v45_v29  ;;  %v333_v35 = vmul.f32 0.001, %v237_v30  ;;  %v238_v36 = vld [vmem:[%s1008_s0 + $0xa0] sm:$0xff] }
  0x2c   :  { %v428_v33 = vadd.f32 %v332_v28, %v140_v27  ;;  %v142_v38 = vmul.f32 0.999, %v46_v31  ;;  %v334_v39 = vmul.f32 0.001, %v238_v36  ;;  %v143_v40 = vmul.f32 0.999, %v47_v37 }
  0x2d   :  { %523 = vst [vmem:[#allocation5 + $0x88] sm:$0xff] %v427_v32  ;;  %v429_v41 = vadd.f32 %v333_v35, %v141_v34  ;;  %v239_v42 = vld [vmem:[%s1008_s0 + $0xa8] sm:$0xff]  ;;  %v48_v43 = vld [vmem:[#allocation2 + $0xb0] sm:$0xff]  ;;  %v49_v49 = vld [vmem:[#allocation2 + $0xb8] sm:$0xff] }
  0x2e   :  { %524 = vst [vmem:[#allocation5 + $0x90] sm:$0xff] %v428_v33  ;;  %v240_v44 = vld [vmem:[%s1008_s0 + $0xb0] sm:$0xff]  ;;  %v430_v45 = vadd.f32 %v334_v39, %v142_v38  ;;  %v335_v46 = vmul.f32 0.001, %v239_v42  ;;  %v144_v47 = vmul.f32 0.999, %v48_v43 }
  0x2f   :  { %v336_v48 = vmul.f32 0.001, %v240_v44  ;;  %525 = vst [vmem:[#allocation5 + $0x98] sm:$0xff] %v429_v41  ;;  %v241_v50 = vld [vmem:[%s1008_s0 + $0xb8] sm:$0xff]  ;;  %v50_v51 = vld [vmem:[#allocation2 + $0xc0] sm:$0xff]  ;;  %v51_v57 = vld [vmem:[#allocation2 + $0xc8] sm:$0xff] }
  0x30   :  { %526 = vst [vmem:[#allocation5 + $0xa0] sm:$0xff] %v430_v45  ;;  %v431_v52 = vadd.f32 %v335_v46, %v143_v40  ;;  %v145_v54 = vmul.f32 0.999, %v49_v49  ;;  %v337_v55 = vmul.f32 0.001, %v241_v50  ;;  %v242_v56 = vld [vmem:[%s1008_s0 + $0xc0] sm:$0xff] }
  0x31   :  { %v432_v53 = vadd.f32 %v336_v48, %v144_v47  ;;  %v146_v58 = vmul.f32 0.999, %v50_v51  ;;  %v338_v59 = vmul.f32 0.001, %v242_v56  ;;  %v147_v60 = vmul.f32 0.999, %v51_v57 }
  0x32   :  { %527 = vst [vmem:[#allocation5 + $0xa8] sm:$0xff] %v431_v52  ;;  %v433_v61 = vadd.f32 %v337_v55, %v145_v54  ;;  %v243_v62 = vld [vmem:[%s1008_s0 + $0xc8] sm:$0xff]  ;;  %v52_v63 = vld [vmem:[#allocation2 + $0xd0] sm:$0xff]  ;;  %v53_v5 = vld [vmem:[#allocation2 + $0xd8] sm:$0xff] }
  0x33   :  { %528 = vst [vmem:[#allocation5 + $0xb0] sm:$0xff] %v432_v53  ;;  %v244_v0 = vld [vmem:[%s1008_s0 + $0xd0] sm:$0xff]  ;;  %v434_v1 = vadd.f32 %v338_v59, %v146_v58  ;;  %v339_v2 = vmul.f32 0.001, %v243_v62  ;;  %v148_v3 = vmul.f32 0.999, %v52_v63 }
  0x34   :  { %v340_v4 = vmul.f32 0.001, %v244_v0  ;;  %529 = vst [vmem:[#allocation5 + $0xb8] sm:$0xff] %v433_v61  ;;  %v245_v6 = vld [vmem:[%s1008_s0 + $0xd8] sm:$0xff]  ;;  %v54_v7 = vld [vmem:[#allocation2 + $0xe0] sm:$0xff]  ;;  %v55_v13 = vld [vmem:[#allocation2 + $0xe8] sm:$0xff] }
  0x35   :  { %530 = vst [vmem:[#allocation5 + $0xc0] sm:$0xff] %v434_v1  ;;  %v435_v8 = vadd.f32 %v339_v2, %v147_v60  ;;  %v149_v10 = vmul.f32 0.999, %v53_v5  ;;  %v341_v11 = vmul.f32 0.001, %v245_v6  ;;  %v246_v12 = vld [vmem:[%s1008_s0 + $0xe0] sm:$0xff] }
  0x36   :  { %v436_v9 = vadd.f32 %v340_v4, %v148_v3  ;;  %v150_v14 = vmul.f32 0.999, %v54_v7  ;;  %v342_v15 = vmul.f32 0.001, %v246_v12  ;;  %v151_v16 = vmul.f32 0.999, %v55_v13 }
  0x37   :  { %531 = vst [vmem:[#allocation5 + $0xc8] sm:$0xff] %v435_v8  ;;  %v437_v17 = vadd.f32 %v341_v11, %v149_v10  ;;  %v247_v18 = vld [vmem:[%s1008_s0 + $0xe8] sm:$0xff]  ;;  %v56_v19 = vld [vmem:[#allocation2 + $0xf0] sm:$0xff]  ;;  %v57_v25 = vld [vmem:[#allocation2 + $0xf8] sm:$0xff] }
  0x38   :  { %532 = vst [vmem:[#allocation5 + $0xd0] sm:$0xff] %v436_v9  ;;  %v248_v20 = vld [vmem:[%s1008_s0 + $0xf0] sm:$0xff]  ;;  %v438_v21 = vadd.f32 %v342_v15, %v150_v14  ;;  %v343_v22 = vmul.f32 0.001, %v247_v18  ;;  %v152_v23 = vmul.f32 0.999, %v56_v19 }
  0x39   :  { %v344_v24 = vmul.f32 0.001, %v248_v20  ;;  %533 = vst [vmem:[#allocation5 + $0xd8] sm:$0xff] %v437_v17  ;;  %v249_v26 = vld [vmem:[%s1008_s0 + $0xf8] sm:$0xff]  ;;  %v58_v27 = vld [vmem:[#allocation2 + $0x100] sm:$0xff]  ;;  %v59_v33 = vld [vmem:[#allocation2 + $0x108] sm:$0xff] }
  0x3a   :  { %534 = vst [vmem:[#allocation5 + $0xe0] sm:$0xff] %v438_v21  ;;  %v439_v28 = vadd.f32 %v343_v22, %v151_v16  ;;  %v153_v30 = vmul.f32 0.999, %v57_v25  ;;  %v345_v31 = vmul.f32 0.001, %v249_v26  ;;  %v250_v32 = vld [vmem:[%s1008_s0 + $0x100] sm:$0xff] }
  0x3b   :  { %v440_v29 = vadd.f32 %v344_v24, %v152_v23  ;;  %v154_v34 = vmul.f32 0.999, %v58_v27  ;;  %v346_v35 = vmul.f32 0.001, %v250_v32  ;;  %v155_v36 = vmul.f32 0.999, %v59_v33 }
  0x3c   :  { %535 = vst [vmem:[#allocation5 + $0xe8] sm:$0xff] %v439_v28  ;;  %v441_v37 = vadd.f32 %v345_v31, %v153_v30  ;;  %v251_v38 = vld [vmem:[%s1008_s0 + $0x108] sm:$0xff]  ;;  %v60_v39 = vld [vmem:[#allocation2 + $0x110] sm:$0xff]  ;;  %v61_v45 = vld [vmem:[#allocation2 + $0x118] sm:$0xff] }
  0x3d   :  { %536 = vst [vmem:[#allocation5 + $0xf0] sm:$0xff] %v440_v29  ;;  %v252_v40 = vld [vmem:[%s1008_s0 + $0x110] sm:$0xff]  ;;  %v442_v41 = vadd.f32 %v346_v35, %v154_v34  ;;  %v347_v42 = vmul.f32 0.001, %v251_v38  ;;  %v156_v43 = vmul.f32 0.999, %v60_v39 }
  0x3e   :  { %v348_v44 = vmul.f32 0.001, %v252_v40  ;;  %537 = vst [vmem:[#allocation5 + $0xf8] sm:$0xff] %v441_v37  ;;  %v253_v46 = vld [vmem:[%s1008_s0 + $0x118] sm:$0xff]  ;;  %v62_v47 = vld [vmem:[#allocation2 + $0x120] sm:$0xff]  ;;  %v63_v53 = vld [vmem:[#allocation2 + $0x128] sm:$0xff] }
  0x3f   :  { %538 = vst [vmem:[#allocation5 + $0x100] sm:$0xff] %v442_v41  ;;  %v443_v48 = vadd.f32 %v347_v42, %v155_v36  ;;  %v157_v50 = vmul.f32 0.999, %v61_v45  ;;  %v349_v51 = vmul.f32 0.001, %v253_v46  ;;  %v254_v52 = vld [vmem:[%s1008_s0 + $0x120] sm:$0xff] }
  0x40   :  { %v444_v49 = vadd.f32 %v348_v44, %v156_v43  ;;  %v158_v54 = vmul.f32 0.999, %v62_v47  ;;  %v350_v55 = vmul.f32 0.001, %v254_v52  ;;  %v159_v56 = vmul.f32 0.999, %v63_v53 }
  0x41   :  { %539 = vst [vmem:[#allocation5 + $0x108] sm:$0xff] %v443_v48  ;;  %v445_v57 = vadd.f32 %v349_v51, %v157_v50  ;;  %v255_v58 = vld [vmem:[%s1008_s0 + $0x128] sm:$0xff]  ;;  %v64_v59 = vld [vmem:[#allocation2 + $0x130] sm:$0xff]  ;;  %v65_v1 = vld [vmem:[#allocation2 + $0x138] sm:$0xff] }
  0x42   :  { %540 = vst [vmem:[#allocation5 + $0x110] sm:$0xff] %v444_v49  ;;  %v256_v60 = vld [vmem:[%s1008_s0 + $0x130] sm:$0xff]  ;;  %v446_v61 = vadd.f32 %v350_v55, %v158_v54  ;;  %v351_v62 = vmul.f32 0.001, %v255_v58  ;;  %v160_v63 = vmul.f32 0.999, %v64_v59 }
  0x43   :  { %v352_v0 = vmul.f32 0.001, %v256_v60  ;;  %541 = vst [vmem:[#allocation5 + $0x118] sm:$0xff] %v445_v57  ;;  %v257_v2 = vld [vmem:[%s1008_s0 + $0x138] sm:$0xff]  ;;  %v66_v3 = vld [vmem:[#allocation2 + $0x140] sm:$0xff]  ;;  %v67_v9 = vld [vmem:[#allocation2 + $0x148] sm:$0xff] }
  0x44   :  { %542 = vst [vmem:[#allocation5 + $0x120] sm:$0xff] %v446_v61  ;;  %v447_v4 = vadd.f32 %v351_v62, %v159_v56  ;;  %v161_v6 = vmul.f32 0.999, %v65_v1  ;;  %v353_v7 = vmul.f32 0.001, %v257_v2  ;;  %v258_v8 = vld [vmem:[%s1008_s0 + $0x140] sm:$0xff] }
  0x45   :  { %v448_v5 = vadd.f32 %v352_v0, %v160_v63  ;;  %v162_v10 = vmul.f32 0.999, %v66_v3  ;;  %v354_v11 = vmul.f32 0.001, %v258_v8  ;;  %v163_v12 = vmul.f32 0.999, %v67_v9 }
  0x46   :  { %543 = vst [vmem:[#allocation5 + $0x128] sm:$0xff] %v447_v4  ;;  %v449_v13 = vadd.f32 %v353_v7, %v161_v6  ;;  %v259_v14 = vld [vmem:[%s1008_s0 + $0x148] sm:$0xff]  ;;  %v68_v15 = vld [vmem:[#allocation2 + $0x150] sm:$0xff]  ;;  %v69_v21 = vld [vmem:[#allocation2 + $0x158] sm:$0xff] }
  0x47   :  { %544 = vst [vmem:[#allocation5 + $0x130] sm:$0xff] %v448_v5  ;;  %v260_v16 = vld [vmem:[%s1008_s0 + $0x150] sm:$0xff]  ;;  %v450_v17 = vadd.f32 %v354_v11, %v162_v10  ;;  %v355_v18 = vmul.f32 0.001, %v259_v14  ;;  %v164_v19 = vmul.f32 0.999, %v68_v15 }
  0x48   :  { %v356_v20 = vmul.f32 0.001, %v260_v16  ;;  %545 = vst [vmem:[#allocation5 + $0x138] sm:$0xff] %v449_v13  ;;  %v261_v22 = vld [vmem:[%s1008_s0 + $0x158] sm:$0xff]  ;;  %v70_v23 = vld [vmem:[#allocation2 + $0x160] sm:$0xff]  ;;  %v71_v29 = vld [vmem:[#allocation2 + $0x168] sm:$0xff] }
  0x49   :  { %546 = vst [vmem:[#allocation5 + $0x140] sm:$0xff] %v450_v17  ;;  %v451_v24 = vadd.f32 %v355_v18, %v163_v12  ;;  %v165_v26 = vmul.f32 0.999, %v69_v21  ;;  %v357_v27 = vmul.f32 0.001, %v261_v22  ;;  %v262_v28 = vld [vmem:[%s1008_s0 + $0x160] sm:$0xff] }
  0x4a   :  { %v452_v25 = vadd.f32 %v356_v20, %v164_v19  ;;  %v166_v30 = vmul.f32 0.999, %v70_v23  ;;  %v358_v31 = vmul.f32 0.001, %v262_v28  ;;  %v167_v32 = vmul.f32 0.999, %v71_v29 }
  0x4b   :  { %547 = vst [vmem:[#allocation5 + $0x148] sm:$0xff] %v451_v24  ;;  %v453_v33 = vadd.f32 %v357_v27, %v165_v26  ;;  %v263_v34 = vld [vmem:[%s1008_s0 + $0x168] sm:$0xff]  ;;  %v72_v35 = vld [vmem:[#allocation2 + $0x170] sm:$0xff]  ;;  %v73_v41 = vld [vmem:[#allocation2 + $0x178] sm:$0xff] }
  0x4c   :  { %548 = vst [vmem:[#allocation5 + $0x150] sm:$0xff] %v452_v25  ;;  %v264_v36 = vld [vmem:[%s1008_s0 + $0x170] sm:$0xff]  ;;  %v454_v37 = vadd.f32 %v358_v31, %v166_v30  ;;  %v359_v38 = vmul.f32 0.001, %v263_v34  ;;  %v168_v39 = vmul.f32 0.999, %v72_v35 }
  0x4d   :  { %v360_v40 = vmul.f32 0.001, %v264_v36  ;;  %549 = vst [vmem:[#allocation5 + $0x158] sm:$0xff] %v453_v33  ;;  %v265_v42 = vld [vmem:[%s1008_s0 + $0x178] sm:$0xff]  ;;  %v74_v43 = vld [vmem:[#allocation2 + $0x180] sm:$0xff]  ;;  %v75_v49 = vld [vmem:[#allocation2 + $0x188] sm:$0xff] }
  0x4e   :  { %550 = vst [vmem:[#allocation5 + $0x160] sm:$0xff] %v454_v37  ;;  %v455_v44 = vadd.f32 %v359_v38, %v167_v32  ;;  %v169_v46 = vmul.f32 0.999, %v73_v41  ;;  %v361_v47 = vmul.f32 0.001, %v265_v42  ;;  %v266_v48 = vld [vmem:[%s1008_s0 + $0x180] sm:$0xff] }
  0x4f   :  { %v456_v45 = vadd.f32 %v360_v40, %v168_v39  ;;  %v170_v50 = vmul.f32 0.999, %v74_v43  ;;  %v362_v51 = vmul.f32 0.001, %v266_v48  ;;  %v171_v52 = vmul.f32 0.999, %v75_v49 }
  0x50   :  { %551 = vst [vmem:[#allocation5 + $0x168] sm:$0xff] %v455_v44  ;;  %v457_v53 = vadd.f32 %v361_v47, %v169_v46  ;;  %v267_v54 = vld [vmem:[%s1008_s0 + $0x188] sm:$0xff]  ;;  %v76_v55 = vld [vmem:[#allocation2 + $0x190] sm:$0xff]  ;;  %v77_v61 = vld [vmem:[#allocation2 + $0x198] sm:$0xff] }
  0x51   :  { %552 = vst [vmem:[#allocation5 + $0x170] sm:$0xff] %v456_v45  ;;  %v268_v56 = vld [vmem:[%s1008_s0 + $0x190] sm:$0xff]  ;;  %v458_v57 = vadd.f32 %v362_v51, %v170_v50  ;;  %v363_v58 = vmul.f32 0.001, %v267_v54  ;;  %v172_v59 = vmul.f32 0.999, %v76_v55 }
  0x52   :  { %v364_v60 = vmul.f32 0.001, %v268_v56  ;;  %553 = vst [vmem:[#allocation5 + $0x178] sm:$0xff] %v457_v53  ;;  %v269_v62 = vld [vmem:[%s1008_s0 + $0x198] sm:$0xff]  ;;  %v78_v63 = vld [vmem:[#allocation2 + $0x1a0] sm:$0xff]  ;;  %v79_v5 = vld [vmem:[#allocation2 + $0x1a8] sm:$0xff] }
  0x53   :  { %554 = vst [vmem:[#allocation5 + $0x180] sm:$0xff] %v458_v57  ;;  %v459_v0 = vadd.f32 %v363_v58, %v171_v52  ;;  %v173_v2 = vmul.f32 0.999, %v77_v61  ;;  %v365_v3 = vmul.f32 0.001, %v269_v62  ;;  %v270_v4 = vld [vmem:[%s1008_s0 + $0x1a0] sm:$0xff] }
  0x54   :  { %v460_v1 = vadd.f32 %v364_v60, %v172_v59  ;;  %v174_v6 = vmul.f32 0.999, %v78_v63  ;;  %v366_v7 = vmul.f32 0.001, %v270_v4  ;;  %v175_v8 = vmul.f32 0.999, %v79_v5 }
  0x55   :  { %555 = vst [vmem:[#allocation5 + $0x188] sm:$0xff] %v459_v0  ;;  %v461_v9 = vadd.f32 %v365_v3, %v173_v2  ;;  %v271_v10 = vld [vmem:[%s1008_s0 + $0x1a8] sm:$0xff]  ;;  %v80_v11 = vld [vmem:[#allocation2 + $0x1b0] sm:$0xff]  ;;  %v81_v17 = vld [vmem:[#allocation2 + $0x1b8] sm:$0xff] }
  0x56   :  { %556 = vst [vmem:[#allocation5 + $0x190] sm:$0xff] %v460_v1  ;;  %v272_v12 = vld [vmem:[%s1008_s0 + $0x1b0] sm:$0xff]  ;;  %v462_v13 = vadd.f32 %v366_v7, %v174_v6  ;;  %v367_v14 = vmul.f32 0.001, %v271_v10  ;;  %v176_v15 = vmul.f32 0.999, %v80_v11 }
  0x57   :  { %v368_v16 = vmul.f32 0.001, %v272_v12  ;;  %557 = vst [vmem:[#allocation5 + $0x198] sm:$0xff] %v461_v9  ;;  %v273_v18 = vld [vmem:[%s1008_s0 + $0x1b8] sm:$0xff]  ;;  %v82_v19 = vld [vmem:[#allocation2 + $0x1c0] sm:$0xff]  ;;  %v83_v25 = vld [vmem:[#allocation2 + $0x1c8] sm:$0xff] }
  0x58   :  { %558 = vst [vmem:[#allocation5 + $0x1a0] sm:$0xff] %v462_v13  ;;  %v463_v20 = vadd.f32 %v367_v14, %v175_v8  ;;  %v177_v22 = vmul.f32 0.999, %v81_v17  ;;  %v369_v23 = vmul.f32 0.001, %v273_v18  ;;  %v274_v24 = vld [vmem:[%s1008_s0 + $0x1c0] sm:$0xff] }
  0x59   :  { %v464_v21 = vadd.f32 %v368_v16, %v176_v15  ;;  %v178_v26 = vmul.f32 0.999, %v82_v19  ;;  %v370_v27 = vmul.f32 0.001, %v274_v24  ;;  %v179_v28 = vmul.f32 0.999, %v83_v25 }
  0x5a   :  { %559 = vst [vmem:[#allocation5 + $0x1a8] sm:$0xff] %v463_v20  ;;  %v465_v29 = vadd.f32 %v369_v23, %v177_v22  ;;  %v275_v30 = vld [vmem:[%s1008_s0 + $0x1c8] sm:$0xff]  ;;  %v84_v31 = vld [vmem:[#allocation2 + $0x1d0] sm:$0xff]  ;;  %v85_v37 = vld [vmem:[#allocation2 + $0x1d8] sm:$0xff] }
  0x5b   :  { %560 = vst [vmem:[#allocation5 + $0x1b0] sm:$0xff] %v464_v21  ;;  %v276_v32 = vld [vmem:[%s1008_s0 + $0x1d0] sm:$0xff]  ;;  %v466_v33 = vadd.f32 %v370_v27, %v178_v26  ;;  %v371_v34 = vmul.f32 0.001, %v275_v30  ;;  %v180_v35 = vmul.f32 0.999, %v84_v31 }
  0x5c   :  { %v372_v36 = vmul.f32 0.001, %v276_v32  ;;  %561 = vst [vmem:[#allocation5 + $0x1b8] sm:$0xff] %v465_v29  ;;  %v277_v38 = vld [vmem:[%s1008_s0 + $0x1d8] sm:$0xff]  ;;  %v86_v39 = vld [vmem:[#allocation2 + $0x1e0] sm:$0xff]  ;;  %v87_v45 = vld [vmem:[#allocation2 + $0x1e8] sm:$0xff] }
  0x5d   :  { %562 = vst [vmem:[#allocation5 + $0x1c0] sm:$0xff] %v466_v33  ;;  %v467_v40 = vadd.f32 %v371_v34, %v179_v28  ;;  %v181_v42 = vmul.f32 0.999, %v85_v37  ;;  %v373_v43 = vmul.f32 0.001, %v277_v38  ;;  %v278_v44 = vld [vmem:[%s1008_s0 + $0x1e0] sm:$0xff] }
  0x5e   :  { %v468_v41 = vadd.f32 %v372_v36, %v180_v35  ;;  %v182_v46 = vmul.f32 0.999, %v86_v39  ;;  %v374_v47 = vmul.f32 0.001, %v278_v44  ;;  %v183_v48 = vmul.f32 0.999, %v87_v45 }
  0x5f   :  { %563 = vst [vmem:[#allocation5 + $0x1c8] sm:$0xff] %v467_v40  ;;  %v469_v49 = vadd.f32 %v373_v43, %v181_v42  ;;  %v279_v50 = vld [vmem:[%s1008_s0 + $0x1e8] sm:$0xff]  ;;  %v88_v51 = vld [vmem:[#allocation2 + $0x1f0] sm:$0xff]  ;;  %v89_v57 = vld [vmem:[#allocation2 + $0x1f8] sm:$0xff] }
  0x60   :  { %564 = vst [vmem:[#allocation5 + $0x1d0] sm:$0xff] %v468_v41  ;;  %v280_v52 = vld [vmem:[%s1008_s0 + $0x1f0] sm:$0xff]  ;;  %v470_v53 = vadd.f32 %v374_v47, %v182_v46  ;;  %v375_v54 = vmul.f32 0.001, %v279_v50  ;;  %v184_v55 = vmul.f32 0.999, %v88_v51 }
  0x61   :  { %v376_v56 = vmul.f32 0.001, %v280_v52  ;;  %565 = vst [vmem:[#allocation5 + $0x1d8] sm:$0xff] %v469_v49  ;;  %v281_v58 = vld [vmem:[%s1008_s0 + $0x1f8] sm:$0xff]  ;;  %v90_v59 = vld [vmem:[#allocation2 + $0x200] sm:$0xff]  ;;  %v91_v1 = vld [vmem:[#allocation2 + $0x208] sm:$0xff] }
  0x62   :  { %566 = vst [vmem:[#allocation5 + $0x1e0] sm:$0xff] %v470_v53  ;;  %v471_v60 = vadd.f32 %v375_v54, %v183_v48  ;;  %v185_v62 = vmul.f32 0.999, %v89_v57  ;;  %v377_v63 = vmul.f32 0.001, %v281_v58  ;;  %v282_v0 = vld [vmem:[%s1008_s0 + $0x200] sm:$0xff] }
  0x63   :  { %v472_v61 = vadd.f32 %v376_v56, %v184_v55  ;;  %v186_v2 = vmul.f32 0.999, %v90_v59  ;;  %v378_v3 = vmul.f32 0.001, %v282_v0  ;;  %v187_v4 = vmul.f32 0.999, %v91_v1 }
  0x64   :  { %567 = vst [vmem:[#allocation5 + $0x1e8] sm:$0xff] %v471_v60  ;;  %v473_v5 = vadd.f32 %v377_v63, %v185_v62  ;;  %v283_v6 = vld [vmem:[%s1008_s0 + $0x208] sm:$0xff]  ;;  %v92_v7 = vld [vmem:[#allocation2 + $0x210] sm:$0xff]  ;;  %v93_v13 = vld [vmem:[#allocation2 + $0x218] sm:$0xff] }
  0x65   :  { %568 = vst [vmem:[#allocation5 + $0x1f0] sm:$0xff] %v472_v61  ;;  %v284_v8 = vld [vmem:[%s1008_s0 + $0x210] sm:$0xff]  ;;  %v474_v9 = vadd.f32 %v378_v3, %v186_v2  ;;  %v379_v10 = vmul.f32 0.001, %v283_v6  ;;  %v188_v11 = vmul.f32 0.999, %v92_v7 }
  0x66   :  { %v380_v12 = vmul.f32 0.001, %v284_v8  ;;  %569 = vst [vmem:[#allocation5 + $0x1f8] sm:$0xff] %v473_v5  ;;  %v285_v14 = vld [vmem:[%s1008_s0 + $0x218] sm:$0xff]  ;;  %v94_v15 = vld [vmem:[#allocation2 + $0x220] sm:$0xff]  ;;  %v95_v21 = vld [vmem:[#allocation2 + $0x228] sm:$0xff] }
  0x67   :  { %570 = vst [vmem:[#allocation5 + $0x200] sm:$0xff] %v474_v9  ;;  %v475_v16 = vadd.f32 %v379_v10, %v187_v4  ;;  %v189_v18 = vmul.f32 0.999, %v93_v13  ;;  %v381_v19 = vmul.f32 0.001, %v285_v14  ;;  %v286_v20 = vld [vmem:[%s1008_s0 + $0x220] sm:$0xff] }
  0x68   :  { %v476_v17 = vadd.f32 %v380_v12, %v188_v11  ;;  %v190_v22 = vmul.f32 0.999, %v94_v15  ;;  %v382_v23 = vmul.f32 0.001, %v286_v20  ;;  %v191_v24 = vmul.f32 0.999, %v95_v21 }
  0x69   :  { %571 = vst [vmem:[#allocation5 + $0x208] sm:$0xff] %v475_v16  ;;  %v477_v25 = vadd.f32 %v381_v19, %v189_v18  ;;  %v287_v26 = vld [vmem:[%s1008_s0 + $0x228] sm:$0xff]  ;;  %v96_v27 = vld [vmem:[#allocation2 + $0x230] sm:$0xff]  ;;  %v97_v33 = vld [vmem:[#allocation2 + $0x238] sm:$0xff] }
  0x6a   :  { %572 = vst [vmem:[#allocation5 + $0x210] sm:$0xff] %v476_v17  ;;  %v288_v28 = vld [vmem:[%s1008_s0 + $0x230] sm:$0xff]  ;;  %v478_v29 = vadd.f32 %v382_v23, %v190_v22  ;;  %v383_v30 = vmul.f32 0.001, %v287_v26  ;;  %v192_v31 = vmul.f32 0.999, %v96_v27 }
  0x6b   :  { %v384_v32 = vmul.f32 0.001, %v288_v28  ;;  %573 = vst [vmem:[#allocation5 + $0x218] sm:$0xff] %v477_v25  ;;  %v289_v34 = vld [vmem:[%s1008_s0 + $0x238] sm:$0xff]  ;;  %v98_v35 = vld [vmem:[#allocation2 + $0x240] sm:$0xff]  ;;  %v99_v41 = vld [vmem:[#allocation2 + $0x248] sm:$0xff] }
  0x6c   :  { %574 = vst [vmem:[#allocation5 + $0x220] sm:$0xff] %v478_v29  ;;  %v479_v36 = vadd.f32 %v383_v30, %v191_v24  ;;  %v193_v38 = vmul.f32 0.999, %v97_v33  ;;  %v385_v39 = vmul.f32 0.001, %v289_v34  ;;  %v290_v40 = vld [vmem:[%s1008_s0 + $0x240] sm:$0xff] }
  0x6d   :  { %v480_v37 = vadd.f32 %v384_v32, %v192_v31  ;;  %v194_v42 = vmul.f32 0.999, %v98_v35  ;;  %v386_v43 = vmul.f32 0.001, %v290_v40  ;;  %v195_v44 = vmul.f32 0.999, %v99_v41 }
  0x6e   :  { %575 = vst [vmem:[#allocation5 + $0x228] sm:$0xff] %v479_v36  ;;  %v481_v45 = vadd.f32 %v385_v39, %v193_v38  ;;  %v291_v46 = vld [vmem:[%s1008_s0 + $0x248] sm:$0xff]  ;;  %v100_v47 = vld [vmem:[#allocation2 + $0x250] sm:$0xff]  ;;  %v101_v53 = vld [vmem:[#allocation2 + $0x258] sm:$0xff] }
  0x6f   :  { %576 = vst [vmem:[#allocation5 + $0x230] sm:$0xff] %v480_v37  ;;  %v292_v48 = vld [vmem:[%s1008_s0 + $0x250] sm:$0xff]  ;;  %v482_v49 = vadd.f32 %v386_v43, %v194_v42  ;;  %v387_v50 = vmul.f32 0.001, %v291_v46  ;;  %v196_v51 = vmul.f32 0.999, %v100_v47 }
  0x70   :  { %v388_v52 = vmul.f32 0.001, %v292_v48  ;;  %577 = vst [vmem:[#allocation5 + $0x238] sm:$0xff] %v481_v45  ;;  %v293_v54 = vld [vmem:[%s1008_s0 + $0x258] sm:$0xff]  ;;  %v102_v55 = vld [vmem:[#allocation2 + $0x260] sm:$0xff]  ;;  %v103_v61 = vld [vmem:[#allocation2 + $0x268] sm:$0xff] }
  0x71   :  { %578 = vst [vmem:[#allocation5 + $0x240] sm:$0xff] %v482_v49  ;;  %v483_v56 = vadd.f32 %v387_v50, %v195_v44  ;;  %v197_v58 = vmul.f32 0.999, %v101_v53  ;;  %v389_v59 = vmul.f32 0.001, %v293_v54  ;;  %v294_v60 = vld [vmem:[%s1008_s0 + $0x260] sm:$0xff] }
  0x72   :  { %v484_v57 = vadd.f32 %v388_v52, %v196_v51  ;;  %v198_v62 = vmul.f32 0.999, %v102_v55  ;;  %v390_v63 = vmul.f32 0.001, %v294_v60  ;;  %v199_v0 = vmul.f32 0.999, %v103_v61 }
  0x73   :  { %579 = vst [vmem:[#allocation5 + $0x248] sm:$0xff] %v483_v56  ;;  %v485_v1 = vadd.f32 %v389_v59, %v197_v58  ;;  %v295_v2 = vld [vmem:[%s1008_s0 + $0x268] sm:$0xff]  ;;  %v104_v3 = vld [vmem:[#allocation2 + $0x270] sm:$0xff]  ;;  %v105_v9 = vld [vmem:[#allocation2 + $0x278] sm:$0xff] }
  0x74   :  { %580 = vst [vmem:[#allocation5 + $0x250] sm:$0xff] %v484_v57  ;;  %v296_v4 = vld [vmem:[%s1008_s0 + $0x270] sm:$0xff]  ;;  %v486_v5 = vadd.f32 %v390_v63, %v198_v62  ;;  %v391_v6 = vmul.f32 0.001, %v295_v2  ;;  %v200_v7 = vmul.f32 0.999, %v104_v3 }
  0x75   :  { %v392_v8 = vmul.f32 0.001, %v296_v4  ;;  %581 = vst [vmem:[#allocation5 + $0x258] sm:$0xff] %v485_v1  ;;  %v297_v10 = vld [vmem:[%s1008_s0 + $0x278] sm:$0xff]  ;;  %v106_v11 = vld [vmem:[#allocation2 + $0x280] sm:$0xff]  ;;  %v107_v17 = vld [vmem:[#allocation2 + $0x288] sm:$0xff] }
  0x76   :  { %582 = vst [vmem:[#allocation5 + $0x260] sm:$0xff] %v486_v5  ;;  %v487_v12 = vadd.f32 %v391_v6, %v199_v0  ;;  %v201_v14 = vmul.f32 0.999, %v105_v9  ;;  %v393_v15 = vmul.f32 0.001, %v297_v10  ;;  %v298_v16 = vld [vmem:[%s1008_s0 + $0x280] sm:$0xff] }
  0x77   :  { %v488_v13 = vadd.f32 %v392_v8, %v200_v7  ;;  %v202_v18 = vmul.f32 0.999, %v106_v11  ;;  %v394_v19 = vmul.f32 0.001, %v298_v16  ;;  %v203_v20 = vmul.f32 0.999, %v107_v17 }
  0x78   :  { %583 = vst [vmem:[#allocation5 + $0x268] sm:$0xff] %v487_v12  ;;  %v489_v21 = vadd.f32 %v393_v15, %v201_v14  ;;  %v299_v22 = vld [vmem:[%s1008_s0 + $0x288] sm:$0xff]  ;;  %v108_v23 = vld [vmem:[#allocation2 + $0x290] sm:$0xff]  ;;  %v109_v29 = vld [vmem:[#allocation2 + $0x298] sm:$0xff] }
  0x79   :  { %584 = vst [vmem:[#allocation5 + $0x270] sm:$0xff] %v488_v13  ;;  %v300_v24 = vld [vmem:[%s1008_s0 + $0x290] sm:$0xff]  ;;  %v490_v25 = vadd.f32 %v394_v19, %v202_v18  ;;  %v395_v26 = vmul.f32 0.001, %v299_v22  ;;  %v204_v27 = vmul.f32 0.999, %v108_v23 }
  0x7a   :  { %v396_v28 = vmul.f32 0.001, %v300_v24  ;;  %585 = vst [vmem:[#allocation5 + $0x278] sm:$0xff] %v489_v21  ;;  %v301_v30 = vld [vmem:[%s1008_s0 + $0x298] sm:$0xff]  ;;  %v110_v31 = vld [vmem:[#allocation2 + $0x2a0] sm:$0xff]  ;;  %v111_v37 = vld [vmem:[#allocation2 + $0x2a8] sm:$0xff] }
  0x7b   :  { %586 = vst [vmem:[#allocation5 + $0x280] sm:$0xff] %v490_v25  ;;  %v491_v32 = vadd.f32 %v395_v26, %v203_v20  ;;  %v205_v34 = vmul.f32 0.999, %v109_v29  ;;  %v397_v35 = vmul.f32 0.001, %v301_v30  ;;  %v302_v36 = vld [vmem:[%s1008_s0 + $0x2a0] sm:$0xff] }
  0x7c   :  { %v492_v33 = vadd.f32 %v396_v28, %v204_v27  ;;  %v206_v38 = vmul.f32 0.999, %v110_v31  ;;  %v398_v39 = vmul.f32 0.001, %v302_v36  ;;  %v207_v40 = vmul.f32 0.999, %v111_v37 }
  0x7d   :  { %587 = vst [vmem:[#allocation5 + $0x288] sm:$0xff] %v491_v32  ;;  %v493_v41 = vadd.f32 %v397_v35, %v205_v34  ;;  %v303_v42 = vld [vmem:[%s1008_s0 + $0x2a8] sm:$0xff]  ;;  %v112_v43 = vld [vmem:[#allocation2 + $0x2b0] sm:$0xff]  ;;  %v113_v49 = vld [vmem:[#allocation2 + $0x2b8] sm:$0xff] }
  0x7e   :  { %588 = vst [vmem:[#allocation5 + $0x290] sm:$0xff] %v492_v33  ;;  %v304_v44 = vld [vmem:[%s1008_s0 + $0x2b0] sm:$0xff]  ;;  %v494_v45 = vadd.f32 %v398_v39, %v206_v38  ;;  %v399_v46 = vmul.f32 0.001, %v303_v42  ;;  %v208_v47 = vmul.f32 0.999, %v112_v43 }
  0x7f   :  { %v400_v48 = vmul.f32 0.001, %v304_v44  ;;  %589 = vst [vmem:[#allocation5 + $0x298] sm:$0xff] %v493_v41  ;;  %v305_v50 = vld [vmem:[%s1008_s0 + $0x2b8] sm:$0xff]  ;;  %v114_v51 = vld [vmem:[#allocation2 + $0x2c0] sm:$0xff]  ;;  %v115_v57 = vld [vmem:[#allocation2 + $0x2c8] sm:$0xff] }
  0x80   :  { %590 = vst [vmem:[#allocation5 + $0x2a0] sm:$0xff] %v494_v45  ;;  %v495_v52 = vadd.f32 %v399_v46, %v207_v40  ;;  %v209_v54 = vmul.f32 0.999, %v113_v49  ;;  %v401_v55 = vmul.f32 0.001, %v305_v50  ;;  %v306_v56 = vld [vmem:[%s1008_s0 + $0x2c0] sm:$0xff] }
  0x81   :  { %v496_v53 = vadd.f32 %v400_v48, %v208_v47  ;;  %v210_v58 = vmul.f32 0.999, %v114_v51  ;;  %v402_v59 = vmul.f32 0.001, %v306_v56  ;;  %v211_v60 = vmul.f32 0.999, %v115_v57 }
  0x82   :  { %591 = vst [vmem:[#allocation5 + $0x2a8] sm:$0xff] %v495_v52  ;;  %v497_v61 = vadd.f32 %v401_v55, %v209_v54  ;;  %v307_v62 = vld [vmem:[%s1008_s0 + $0x2c8] sm:$0xff]  ;;  %v116_v63 = vld [vmem:[#allocation2 + $0x2d0] sm:$0xff]  ;;  %v117_v5 = vld [vmem:[#allocation2 + $0x2d8] sm:$0xff] }
  0x83   :  { %592 = vst [vmem:[#allocation5 + $0x2b0] sm:$0xff] %v496_v53  ;;  %v308_v0 = vld [vmem:[%s1008_s0 + $0x2d0] sm:$0xff]  ;;  %v498_v1 = vadd.f32 %v402_v59, %v210_v58  ;;  %v403_v2 = vmul.f32 0.001, %v307_v62  ;;  %v212_v3 = vmul.f32 0.999, %v116_v63 }
  0x84   :  { %v404_v4 = vmul.f32 0.001, %v308_v0  ;;  %593 = vst [vmem:[#allocation5 + $0x2b8] sm:$0xff] %v497_v61  ;;  %v309_v6 = vld [vmem:[%s1008_s0 + $0x2d8] sm:$0xff]  ;;  %v118_v7 = vld [vmem:[#allocation2 + $0x2e0] sm:$0xff]  ;;  %v119_v13 = vld [vmem:[#allocation2 + $0x2e8] sm:$0xff] }
  0x85   :  { %594 = vst [vmem:[#allocation5 + $0x2c0] sm:$0xff] %v498_v1  ;;  %v499_v8 = vadd.f32 %v403_v2, %v211_v60  ;;  %v213_v10 = vmul.f32 0.999, %v117_v5  ;;  %v405_v11 = vmul.f32 0.001, %v309_v6  ;;  %v310_v12 = vld [vmem:[%s1008_s0 + $0x2e0] sm:$0xff] }
  0x86   :  { %v500_v9 = vadd.f32 %v404_v4, %v212_v3  ;;  %v214_v14 = vmul.f32 0.999, %v118_v7  ;;  %v406_v15 = vmul.f32 0.001, %v310_v12  ;;  %v215_v16 = vmul.f32 0.999, %v119_v13 }
  0x87   :  { %595 = vst [vmem:[#allocation5 + $0x2c8] sm:$0xff] %v499_v8  ;;  %v501_v17 = vadd.f32 %v405_v11, %v213_v10  ;;  %v311_v18 = vld [vmem:[%s1008_s0 + $0x2e8] sm:$0xff]  ;;  %v120_v19 = vld [vmem:[#allocation2 + $0x2f0] sm:$0xff]  ;;  %v121_v25 = vld [vmem:[#allocation2 + $0x2f8] sm:$0xff] }
  0x88   :  { %596 = vst [vmem:[#allocation5 + $0x2d0] sm:$0xff] %v500_v9  ;;  %v312_v20 = vld [vmem:[%s1008_s0 + $0x2f0] sm:$0xff]  ;;  %v502_v21 = vadd.f32 %v406_v15, %v214_v14  ;;  %v407_v22 = vmul.f32 0.001, %v311_v18  ;;  %v216_v23 = vmul.f32 0.999, %v120_v19 }
  0x89   :  { %v408_v24 = vmul.f32 0.001, %v312_v20  ;;  %597 = vst [vmem:[#allocation5 + $0x2d8] sm:$0xff] %v501_v17  ;;  %v313_v26 = vld [vmem:[%s1008_s0 + $0x2f8] sm:$0xff]  ;;  %v217_v29 = vmul.f32 0.999, %v121_v25 }
  0x8a   :  { %598 = vst [vmem:[#allocation5 + $0x2e0] sm:$0xff] %v502_v21  ;;  %v503_v27 = vadd.f32 %v407_v22, %v215_v16  ;;  %v409_v30 = vmul.f32 0.001, %v313_v26 }
  0x8b   :  { %v504_v28 = vadd.f32 %v408_v24, %v216_v23 }
  0x8c   :  { %599 = vst [vmem:[#allocation5 + $0x2e8] sm:$0xff] %v503_v27  ;;  %v505_v31 = vadd.f32 %v409_v30, %v217_v29 }
  0x8d   :  { %600 = vst [vmem:[#allocation5 + $0x2f0] sm:$0xff] %v504_v28 }
  0x8e   :  { %601 = vst [vmem:[#allocation5 + $0x2f8] sm:$0xff] %v505_v31 }
  0x8f   :  { %656 = shalt.err (!%p653_p12)
}
  0x90   :  { %s657_s29 = scalar_lea.hbm %s1010_s2, 12288 }
  0x91   :  { %p658_p13 = scmp.ne.s32.totalorder %s1010_s2, %s657_s29  ;;  %p661_p0 = scmp.lt.u32.totalorder %s657_s29, %s1010_s2 }
  0x93   :  { %p663_p1 = pnand %p661_p0, %p658_p13 }
  0x95   :  { %666 = shalt.err (!%p663_p1)
}
  0x96   :  { %613 = dma.vmem_to_hbm [thread:$0]  %s608_s27, 12288, %s1010_s2, [#allocation4], %s672_s19, %s672_s19, %s673_s20  }
  0x97   :  { %669 = dma.done.wait [#allocation4], 12288  }
  0x98   :  { %670 = vsyncadd [#allocation4], 4294955008 }
  0x99   :  { %617 = vsyncpa [#allocation3], 1 }
  0x9a   :  { %618 = vsyncpa [#allocation4], 1 }

</bundles_post_ra>
